<compile_context>
chip_gen: v7x
topology: tpu7x:2x2x1
jax: 0.10.0
libtpu: 0.0.40
codegen_flags: <defaults>
</compile_context>

<pallas_src>
import math

import jax
import jax.numpy as jnp
from jax import lax
from jax.experimental import pallas as pl
from jax.experimental.pallas import tpu as pltpu


# ---------------------------------------------------------------------------
# Kernel
# ---------------------------------------------------------------------------
def _make_attention_kernel(scale, write_attn):
    """Builds the kernel body; `scale` (1/sqrt(d)) and `write_attn` are static."""

    def kernel(out_ref, ctx_ref, wk_ref, wq_ref, wv_ref,
               wo_ctx_ref, wo_out_ref, bo_ref, o_ref, *attn_refs):
        nb, t_out, d = out_ref.shape
        _, t_in, e2 = ctx_ref.shape

        out_f32 = out_ref[...]                        # (NB, T_out, D)
        ctx_f32 = ctx_ref[...]                        # (NB, T_in,  E2)
        # Reshapes are layout no-ops when T_out / T_in are multiples of 8.
        out_bf = out_f32.reshape(nb * t_out, d).astype(jnp.bfloat16)
        ctx_bf = ctx_f32.reshape(nb * t_in, e2).astype(jnp.bfloat16)

        # K/Q/V projections as fused (NB*T, F) MXU matmuls: bf16 operands,
        # f32 accumulation.
        key = jnp.dot(ctx_bf, wk_ref[...].astype(jnp.bfloat16),
                      preferred_element_type=jnp.float32)         # (NB*T_in, D)
        query = jnp.dot(out_bf, wq_ref[...].astype(jnp.bfloat16),
                        preferred_element_type=jnp.float32)       # (NB*T_out, D)
        value = jnp.dot(ctx_bf, wv_ref[...].astype(jnp.bfloat16),
                        preferred_element_type=jnp.float32)       # (NB*T_in, E2)

        # Fold the 1/sqrt(d) score scaling into the query's f32->bf16 cast
        # (cheap VPU op, hidden under MXU-bound execution).
        q_bf = (query * scale).astype(jnp.bfloat16).reshape(nb, t_out, d)
        k_bf = key.astype(jnp.bfloat16).reshape(nb, t_in, d)

        # Batched scores: contract the last axes directly -- no key.T / XLU
        # transpose.  bf16 operands, f32 accumulation.
        scores = lax.dot_general(
            q_bf, k_bf,
            dimension_numbers=(((2,), (2,)), ((0,), (0,))),
            preferred_element_type=jnp.float32)                   # (NB, T_out, T_in)

        # The reference's masked_fill is non-in-place and its result is
        # discarded, so masking is intentionally a no-op here.

        # Numerically stable softmax along the last axis (f32); approximate
        # reciprocal lowers to the otherwise-idle EUP slot.
        m = jnp.max(scores, axis=-1, keepdims=True)
        p = jnp.exp(scores - m)
        attn = p * pl.reciprocal(jnp.sum(p, axis=-1, keepdims=True), approx=True)
        if write_attn:
            attn_refs[0][...] = attn

        # Attention-weighted context (batched MXU matmul, bf16 operands).
        ctx_mix = lax.dot_general(
            attn.astype(jnp.bfloat16),
            value.astype(jnp.bfloat16).reshape(nb, t_in, e2),
            dimension_numbers=(((2,), (1,)), ((0,), (0,))),
            preferred_element_type=jnp.float32)                   # (NB, T_out, E2)

        # Output projection without materializing the concat:
        #   tanh([ctx_mix, out] @ Wo + bo)
        #     == tanh(ctx_mix @ Wo_ctx + out @ Wo_out + bo)
        o = jnp.tanh(
            jnp.dot(ctx_mix.reshape(nb * t_out, e2).astype(jnp.bfloat16),
                    wo_ctx_ref[...].astype(jnp.bfloat16),
                    preferred_element_type=jnp.float32)
            + jnp.dot(out_bf, wo_out_ref[...].astype(jnp.bfloat16),
                      preferred_element_type=jnp.float32)
            + bo_ref[...])
        o_ref[...] = o.reshape(nb, t_out, d)

    return kernel


# ---------------------------------------------------------------------------
# Sizing helpers
# ---------------------------------------------------------------------------
def _vmem_limit_bytes():
    """Generation-aware VMEM limit: 75% of physical VMEM, capped at 100 MiB.
    -> ~48 MiB on v7x (64 MiB physical), ~96 MiB on v5e/v6e (128 MiB)."""
    cap = None
    try:  # capability probe only; a failure here is not a correctness issue
        info = pltpu.get_tpu_info()
        cap = getattr(info, "vmem_capacity_bytes", None)
    except Exception:
        cap = None
    if not cap:
        cap = 64 * 1024 * 1024  # conservative: v7x physical VMEM
    return min(int(cap * 3 // 4), 100 * 1024 * 1024)


def _step_vmem_bytes(nb, t_out, t_in, d, e2, return_attn, weight_bytes):
    """Rough per-grid-step VMEM footprint (pipeline buffers + live temps)."""
    f32, bf16 = 4, 2
    # Pipeline blocks (Pallas double-buffers inputs and outputs).
    blocks = 2 * f32 * (nb * t_out * d + nb * t_in * e2 + nb * t_out * d)
    if return_attn:
        blocks += 2 * f32 * nb * t_out * t_in
    # Weight blocks (constant index_map -> fetched once, still allocated x2).
    blocks += 2 * weight_bytes
    # Live in-kernel temporaries: f32 intermediates + bf16 casts (rough bound).
    temps = f32 * nb * (t_in * d + t_out * d + t_in * e2
                        + 3 * t_out * t_in + t_out * e2 + t_out * d)
    temps += bf16 * nb * (2 * t_out * d + 2 * t_in * e2 + t_in * d
                          + t_out * t_in + t_out * e2)
    temps += (weight_bytes // f32) * bf16
    return blocks + temps


def _pick_batch_block(B, T_out, T_in, D, E2, return_attn, weight_bytes,
                      vmem_budget):
    """Largest divisor of B such that (a) the grid has >= 2 steps when B >= 2
    (so both v7x TensorCores get work), (b) the flattened projection matmuls
    stay around <= 2048 rows per step (amortizes the ~0.35us/step overhead),
    and (c) the estimated per-step working set fits the VMEM budget."""
    min_steps = 2 if B >= 2 else 1
    target_rows = 2048
    for nb in range(B, 0, -1):
        if B % nb:
            continue
        if B // nb < min_steps:
            continue
        if nb > 1 and nb * max(T_out, T_in, 1) > target_rows:
            continue
        if _step_vmem_bytes(nb, T_out, T_in, D, E2, return_attn,
                            weight_bytes) > vmem_budget:
            continue
        return nb
    return 1


# ---------------------------------------------------------------------------
# Wrapper
# ---------------------------------------------------------------------------
def attention_forward(output, context, mask, params, dec_hidden_size, *,
                      batch_block=None, return_attn=True):
    """Pallas wrapper.  The grid iterates over blocks of NB batch elements;
    each grid step solves NB full (T_out, T_in) attention problems in VMEM."""
    del mask  # masked_fill result is discarded in the reference -> no effect
    B, T_out, D = output.shape
    _, T_in, E2 = context.shape

    # Split the output projection so the kernel never concatenates
    # [ctx_mix, output]:  Wo = [Wo_ctx ; Wo_out].
    wo_ctx = params["wo"][:E2]          # (E2, D)
    wo_out = params["wo"][E2:]          # (D,  D)
    weights = (params["wk"], params["wq"], params["wv"], wo_ctx, wo_out,
               params["bo"])
    weight_bytes = sum(int(w.size) * 4 for w in weights)

    vmem_limit = _vmem_limit_bytes()
    if batch_block is not None:
        NB = batch_block
    else:
        NB = _pick_batch_block(B, T_out, T_in, D, E2, return_attn,
                               weight_bytes, int(vmem_limit * 0.7))
    assert B % NB == 0, "batch block must divide the batch size"
    grid = (B // NB,)

    scale = 1.0 / math.sqrt(float(dec_hidden_size))
    kernel = _make_attention_kernel(scale, return_attn)

    def batched(t, f):
        return pl.BlockSpec((NB, t, f), lambda b: (b, 0, 0))

    def weight_spec(arr):
        nd = arr.ndim
        # Constant index_map -> the weight tile is DMA'd once and reused.
        return pl.BlockSpec(arr.shape, lambda b: (0,) * nd)

    out_shapes = [jax.ShapeDtypeStruct((B, T_out, D), jnp.float32)]
    out_specs = [batched(T_out, D)]
    if return_attn:
        out_shapes.append(jax.ShapeDtypeStruct((B, T_out, T_in), jnp.float32))
        out_specs.append(batched(T_out, T_in))

    result = pl.pallas_call(
        kernel,
        out_shape=tuple(out_shapes),
        grid_spec=pltpu.PrefetchScalarGridSpec(
            num_scalar_prefetch=0,
            grid=grid,
            in_specs=[
                batched(T_out, D),           # output block
                batched(T_in, E2),           # context block
                weight_spec(params["wk"]),
                weight_spec(params["wq"]),
                weight_spec(params["wv"]),
                weight_spec(wo_ctx),
                weight_spec(wo_out),
                weight_spec(params["bo"]),
            ],
            out_specs=out_specs,
        ),
        compiler_params=pltpu.CompilerParams(
            dimension_semantics=("parallel",),
            vmem_limit_bytes=vmem_limit,
        ),
    )(output, context, *weights)

    if return_attn:
        return result
    return result[0]


# ---------------------------------------------------------------------------
# Params / reference
# ---------------------------------------------------------------------------
def make_params(key, enc_hidden_size, dec_hidden_size):
    """Deterministic parameter init (synthetic; shapes match nn.Linear weights,
    stored transposed as (in_features, out_features))."""
    e2 = enc_hidden_size * 2
    k1, k2, k3, k4, k5 = jax.random.split(key, 5)
    return {
        "wk": jax.random.normal(k1, (e2, dec_hidden_size), jnp.float32) * 0.1,
        "wq": jax.random.normal(k2, (dec_hidden_size, dec_hidden_size), jnp.float32) * 0.1,
        "wv": jax.random.normal(k3, (e2, e2), jnp.float32) * 0.1,
        "wo": jax.random.normal(k4, (e2 + dec_hidden_size, dec_hidden_size), jnp.float32) * 0.1,
        "bo": jax.random.normal(k5, (1, dec_hidden_size), jnp.float32) * 0.1,
    }


def reference_forward(output, context, mask, params, dec_hidden_size):
    """Pure-JAX f32 reference mirroring the PyTorch forward exactly."""
    key = context @ params["wk"]
    query = output @ params["wq"]
    value = context @ params["wv"]
    attn = jnp.einsum("bqd,bkd->bqk", query, key) / jnp.sqrt(
        jnp.float32(dec_hidden_size))
    # masked_fill in the reference is a no-op (result discarded).
    attn = jax.nn.softmax(attn, axis=-1)
    ctx = jnp.einsum("bqk,bkf->bqf", attn, value)
    cat = jnp.concatenate([ctx, output], axis=-1)
    out = jnp.tanh(cat @ params["wo"] + params["bo"][0])
    return out, attn


if __name__ == "__main__":
    enc_hidden_size = 16
    dec_hidden_size = 32
    B, T_out, T_in = 2, 8, 8
    e2 = enc_hidden_size * 2

    root = jax.random.PRNGKey(0)
    kp, ko, kc = jax.random.split(root, 3)

    params = make_params(kp, enc_hidden_size, dec_hidden_size)
    output = jax.random.normal(ko, (B, T_out, dec_hidden_size), jnp.float32)
    context = jax.random.normal(kc, (B, T_in, e2), jnp.float32)
    mask = jnp.ones((B, T_out, T_in), dtype=jnp.bool_)  # unused (matches ref)

    out, attn = attention_forward(output, context, mask, params, dec_hidden_size)
    out = jax.block_until_ready(out)
    attn = jax.block_until_ready(attn)

    ref_out, ref_attn = reference_forward(output, context, mask, params,
                                          dec_hidden_size)
    # bf16 MXU operands (f32 accumulation) + approx reciprocal -> relaxed tol
    # vs. the pure-f32 reference.
    assert jnp.allclose(out, ref_out, atol=2e-2, rtol=2e-2)
    assert jnp.allclose(attn, ref_attn, atol=1e-2, rtol=1e-2)

    # Exercise the attn-less fast path (skips the (B, T_out, T_in) HBM store).
    out_only = attention_forward(output, context, mask, params,
                                 dec_hidden_size, return_attn=False)
    out_only = jax.block_until_ready(out_only)
    assert jnp.allclose(out_only, out, atol=1e-6, rtol=1e-6)

    print("KERNEL_OK")
</pallas_src>

<mosaic_0001>
module attributes {stable_mosaic.version = 11 : i64} {
  func.func @kernel(%arg0: i32, %arg1: memref<1x8x32xf32, #tpu.memory_space<vmem>>, %arg2: memref<1x8x32xf32, #tpu.memory_space<vmem>>, %arg3: memref<32x32xf32, #tpu.memory_space<vmem>>, %arg4: memref<32x32xf32, #tpu.memory_space<vmem>>, %arg5: memref<32x32xf32, #tpu.memory_space<vmem>>, %arg6: memref<32x32xf32, #tpu.memory_space<vmem>>, %arg7: memref<32x32xf32, #tpu.memory_space<vmem>>, %arg8: memref<1x32xf32, #tpu.memory_space<vmem>>, %arg9: memref<1x8x32xf32, #tpu.memory_space<vmem>>, %arg10: memref<1x8x8xf32, #tpu.memory_space<vmem>>) attributes {dimension_semantics = [#tpu.dimension_semantics<parallel>], iteration_bounds = array<i64: 2>, scalar_prefetch = 0 : i64, scratch_operands = 0 : i64, tpu.core_type = #tpu.core_type<tc>, window_params = [{transform_indices = @transform_0, window_bounds = array<i64: 1, 8, 32>}, {transform_indices = @transform_1, window_bounds = array<i64: 1, 8, 32>}, {pipeline_mode = #tpu.pipeline_mode<synchronous>, transform_indices = @transform_2, window_bounds = array<i64: 32, 32>}, {pipeline_mode = #tpu.pipeline_mode<synchronous>, transform_indices = @transform_3, window_bounds = array<i64: 32, 32>}, {pipeline_mode = #tpu.pipeline_mode<synchronous>, transform_indices = @transform_4, window_bounds = array<i64: 32, 32>}, {pipeline_mode = #tpu.pipeline_mode<synchronous>, transform_indices = @transform_5, window_bounds = array<i64: 32, 32>}, {pipeline_mode = #tpu.pipeline_mode<synchronous>, transform_indices = @transform_6, window_bounds = array<i64: 32, 32>}, {pipeline_mode = #tpu.pipeline_mode<synchronous>, transform_indices = @transform_7, window_bounds = array<i64: 1, 32>}, {transform_indices = @transform_8, window_bounds = array<i64: 1, 8, 32>}, {transform_indices = @transform_9, window_bounds = array<i64: 1, 8, 8>}]} {
    %c0 = arith.constant 0 : index
    %c0_0 = arith.constant 0 : index
    %c0_1 = arith.constant 0 : index
    %0 = vector.load %arg1[%c0, %c0_0, %c0_1] : memref<1x8x32xf32, #tpu.memory_space<vmem>>, vector<1x8x32xf32>
    %c0_2 = arith.constant 0 : index
    %c0_3 = arith.constant 0 : index
    %c0_4 = arith.constant 0 : index
    %1 = vector.load %arg2[%c0_2, %c0_3, %c0_4] : memref<1x8x32xf32, #tpu.memory_space<vmem>>, vector<1x8x32xf32>
    %2 = vector.shape_cast %0 : vector<1x8x32xf32> to vector<8x32xf32>
    %3 = arith.truncf %2 : vector<8x32xf32> to vector<8x32xbf16>
    %4 = vector.shape_cast %1 : vector<1x8x32xf32> to vector<8x32xf32>
    %5 = arith.truncf %4 : vector<8x32xf32> to vector<8x32xbf16>
    %c0_5 = arith.constant 0 : index
    %c0_6 = arith.constant 0 : index
    %6 = vector.load %arg3[%c0_5, %c0_6] : memref<32x32xf32, #tpu.memory_space<vmem>>, vector<32x32xf32>
    %7 = arith.truncf %6 : vector<32x32xf32> to vector<32x32xbf16>
    %cst = arith.constant dense<0.000000e+00> : vector<8x32xf32>
    %8 = tpu.matmul %5, %7, %cst {dimension_numbers = #tpu.dot_dimension_numbers<[1], [0], [0], [1], [0, 0, 1, 1], [], []>} : vector<8x32xbf16>, vector<32x32xbf16>, vector<8x32xf32> -> vector<8x32xf32>
    %c0_7 = arith.constant 0 : index
    %c0_8 = arith.constant 0 : index
    %9 = vector.load %arg4[%c0_7, %c0_8] : memref<32x32xf32, #tpu.memory_space<vmem>>, vector<32x32xf32>
    %10 = arith.truncf %9 : vector<32x32xf32> to vector<32x32xbf16>
    %cst_9 = arith.constant dense<0.000000e+00> : vector<8x32xf32>
    %11 = tpu.matmul %3, %10, %cst_9 {dimension_numbers = #tpu.dot_dimension_numbers<[1], [0], [0], [1], [0, 0, 1, 1], [], []>} : vector<8x32xbf16>, vector<32x32xbf16>, vector<8x32xf32> -> vector<8x32xf32>
    %c0_10 = arith.constant 0 : index
    %c0_11 = arith.constant 0 : index
    %12 = vector.load %arg5[%c0_10, %c0_11] : memref<32x32xf32, #tpu.memory_space<vmem>>, vector<32x32xf32>
    %13 = arith.truncf %12 : vector<32x32xf32> to vector<32x32xbf16>
    %cst_12 = arith.constant dense<0.000000e+00> : vector<8x32xf32>
    %14 = tpu.matmul %5, %13, %cst_12 {dimension_numbers = #tpu.dot_dimension_numbers<[1], [0], [0], [1], [0, 0, 1, 1], [], []>} : vector<8x32xbf16>, vector<32x32xbf16>, vector<8x32xf32> -> vector<8x32xf32>
    %cst_13 = arith.constant 0.176776692 : f32
    %15 = vector.broadcast %cst_13 : f32 to vector<8x32xf32>
    %16 = arith.mulf %11, %15 : vector<8x32xf32>
    %17 = arith.truncf %16 : vector<8x32xf32> to vector<8x32xbf16>
    %18 = vector.shape_cast %17 : vector<8x32xbf16> to vector<1x8x32xbf16>
    %19 = arith.truncf %8 : vector<8x32xf32> to vector<8x32xbf16>
    %20 = vector.shape_cast %19 : vector<8x32xbf16> to vector<1x8x32xbf16>
    %cst_14 = arith.constant dense<0.000000e+00> : vector<1x8x8xf32>
    %21 = tpu.matmul %18, %20, %cst_14 {dimension_numbers = #tpu.dot_dimension_numbers<[2], [2], [1], [1], [0, 0, 0, 1, 1, 1], [0], [0]>} : vector<1x8x32xbf16>, vector<1x8x32xbf16>, vector<1x8x8xf32> -> vector<1x8x8xf32>
    %cst_15 = arith.constant dense<0xFF800000> : vector<1x8xf32>
    %22 = vector.multi_reduction <maximumf>, %21, %cst_15 [2] : vector<1x8x8xf32> to vector<1x8xf32>
    %23 = vector.shape_cast %22 : vector<1x8xf32> to vector<1x8x1xf32>
    %24 = vector.broadcast %23 : vector<1x8x1xf32> to vector<1x8x8xf32>
    %25 = arith.subf %21, %24 : vector<1x8x8xf32>
    %26 = math.exp %25 : vector<1x8x8xf32>
    %cst_16 = arith.constant dense<0.000000e+00> : vector<1x8xf32>
    %27 = vector.multi_reduction <add>, %26, %cst_16 [2] : vector<1x8x8xf32> to vector<1x8xf32>
    %28 = vector.shape_cast %27 : vector<1x8xf32> to vector<1x8x1xf32>
    %29 = tpu.reciprocal %28 {approx = true} : vector<1x8x1xf32> -> vector<1x8x1xf32>
    %30 = vector.broadcast %29 : vector<1x8x1xf32> to vector<1x8x8xf32>
    %31 = arith.mulf %26, %30 : vector<1x8x8xf32>
    %c0_17 = arith.constant 0 : index
    %c0_18 = arith.constant 0 : index
    %c0_19 = arith.constant 0 : index
    %32 = vector.load %arg10[%c0_17, %c0_18, %c0_19] : memref<1x8x8xf32, #tpu.memory_space<vmem>>, vector<1x8x8xf32>
    tpu.vector_store %arg10[%c0_17, %c0_18, %c0_19], %31 {strides = array<i32>} : memref<1x8x8xf32, #tpu.memory_space<vmem>>, vector<1x8x8xf32>,
    %33 = arith.truncf %31 : vector<1x8x8xf32> to vector<1x8x8xbf16>
    %34 = arith.truncf %14 : vector<8x32xf32> to vector<8x32xbf16>
    %35 = vector.shape_cast %34 : vector<8x32xbf16> to vector<1x8x32xbf16>
    %cst_20 = arith.constant dense<0.000000e+00> : vector<1x8x32xf32>
    %36 = tpu.matmul %33, %35, %cst_20 {dimension_numbers = #tpu.dot_dimension_numbers<[2], [1], [1], [2], [0, 0, 0, 1, 1, 2], [0], [0]>} : vector<1x8x8xbf16>, vector<1x8x32xbf16>, vector<1x8x32xf32> -> vector<1x8x32xf32>
    %37 = vector.shape_cast %36 : vector<1x8x32xf32> to vector<8x32xf32>
    %38 = arith.truncf %37 : vector<8x32xf32> to vector<8x32xbf16>
    %c0_21 = arith.constant 0 : index
    %c0_22 = arith.constant 0 : index
    %39 = vector.load %arg6[%c0_21, %c0_22] : memref<32x32xf32, #tpu.memory_space<vmem>>, vector<32x32xf32>
    %40 = arith.truncf %39 : vector<32x32xf32> to vector<32x32xbf16>
    %cst_23 = arith.constant dense<0.000000e+00> : vector<8x32xf32>
    %41 = tpu.matmul %38, %40, %cst_23 {dimension_numbers = #tpu.dot_dimension_numbers<[1], [0], [0], [1], [0, 0, 1, 1], [], []>} : vector<8x32xbf16>, vector<32x32xbf16>, vector<8x32xf32> -> vector<8x32xf32>
    %c0_24 = arith.constant 0 : index
    %c0_25 = arith.constant 0 : index
    %42 = vector.load %arg7[%c0_24, %c0_25] : memref<32x32xf32, #tpu.memory_space<vmem>>, vector<32x32xf32>
    %43 = arith.truncf %42 : vector<32x32xf32> to vector<32x32xbf16>
    %cst_26 = arith.constant dense<0.000000e+00> : vector<8x32xf32>
    %44 = tpu.matmul %3, %43, %cst_26 {dimension_numbers = #tpu.dot_dimension_numbers<[1], [0], [0], [1], [0, 0, 1, 1], [], []>} : vector<8x32xbf16>, vector<32x32xbf16>, vector<8x32xf32> -> vector<8x32xf32>
    %45 = arith.addf %41, %44 : vector<8x32xf32>
    %c0_27 = arith.constant 0 : index
    %c0_28 = arith.constant 0 : index
    %46 = vector.load %arg8[%c0_27, %c0_28] : memref<1x32xf32, #tpu.memory_space<vmem>>, vector<1x32xf32>
    %47 = vector.broadcast %46 : vector<1x32xf32> to vector<8x32xf32>
    %48 = arith.addf %45, %47 : vector<8x32xf32>
    %49 = math.tanh %48 : vector<8x32xf32>
    %50 = vector.shape_cast %49 : vector<8x32xf32> to vector<1x8x32xf32>
    %c0_29 = arith.constant 0 : index
    %c0_30 = arith.constant 0 : index
    %c0_31 = arith.constant 0 : index
    %51 = vector.load %arg9[%c0_29, %c0_30, %c0_31] : memref<1x8x32xf32, #tpu.memory_space<vmem>>, vector<1x8x32xf32>
    tpu.vector_store %arg9[%c0_29, %c0_30, %c0_31], %50 {strides = array<i32>} : memref<1x8x32xf32, #tpu.memory_space<vmem>>, vector<1x8x32xf32>,
    return
  }
  func.func @transform_0(%arg0: i32) -> (i32, i32, i32) {
    %c0_i32 = arith.constant 0 : i32
    %c0_i32_0 = arith.constant 0 : i32
    %c0_i32_1 = arith.constant 0 : i32
    return %arg0, %c0_i32, %c0_i32_0 : i32, i32, i32
  }
  func.func @transform_1(%arg0: i32) -> (i32, i32, i32) {
    %c0_i32 = arith.constant 0 : i32
    %c0_i32_0 = arith.constant 0 : i32
    %c0_i32_1 = arith.constant 0 : i32
    return %arg0, %c0_i32, %c0_i32_0 : i32, i32, i32
  }
  func.func @transform_2(%arg0: i32) -> (i32, i32) {
    %c0_i32 = arith.constant 0 : i32
    %c0_i32_0 = arith.constant 0 : i32
    %c0_i32_1 = arith.constant 0 : i32
    return %c0_i32, %c0_i32_0 : i32, i32
  }
  func.func @transform_3(%arg0: i32) -> (i32, i32) {
    %c0_i32 = arith.constant 0 : i32
    %c0_i32_0 = arith.constant 0 : i32
    %c0_i32_1 = arith.constant 0 : i32
    return %c0_i32, %c0_i32_0 : i32, i32
  }
  func.func @transform_4(%arg0: i32) -> (i32, i32) {
    %c0_i32 = arith.constant 0 : i32
    %c0_i32_0 = arith.constant 0 : i32
    %c0_i32_1 = arith.constant 0 : i32
    return %c0_i32, %c0_i32_0 : i32, i32
  }
  func.func @transform_5(%arg0: i32) -> (i32, i32) {
    %c0_i32 = arith.constant 0 : i32
    %c0_i32_0 = arith.constant 0 : i32
    %c0_i32_1 = arith.constant 0 : i32
    return %c0_i32, %c0_i32_0 : i32, i32
  }
  func.func @transform_6(%arg0: i32) -> (i32, i32) {
    %c0_i32 = arith.constant 0 : i32
    %c0_i32_0 = arith.constant 0 : i32
    %c0_i32_1 = arith.constant 0 : i32
    return %c0_i32, %c0_i32_0 : i32, i32
  }
  func.func @transform_7(%arg0: i32) -> (i32, i32) {
    %c0_i32 = arith.constant 0 : i32
    %c0_i32_0 = arith.constant 0 : i32
    %c0_i32_1 = arith.constant 0 : i32
    return %c0_i32, %c0_i32_0 : i32, i32
  }
  func.func @transform_8(%arg0: i32) -> (i32, i32, i32) {
    %c0_i32 = arith.constant 0 : i32
    %c0_i32_0 = arith.constant 0 : i32
    %c0_i32_1 = arith.constant 0 : i32
    return %arg0, %c0_i32, %c0_i32_0 : i32, i32, i32
  }
  func.func @transform_9(%arg0: i32) -> (i32, i32, i32) {
    %c0_i32 = arith.constant 0 : i32
    %c0_i32_0 = arith.constant 0 : i32
    %c0_i32_1 = arith.constant 0 : i32
    return %arg0, %c0_i32, %c0_i32_0 : i32, i32, i32
  }
}

</mosaic_0001>

<bundles_post_ra>
// kernel: tpu_custom_call.1
= control target key start
LH: loop header
LB: loop body
LE: loop exit
PB: predicated region body
PF: predicated region fallthrough
CT: control target
= control target key end

     0   :  { %s2067_s0 = inlined_call_operand.hbm [shape: f32[2,8,32], index: 0, kind: input, shape index: {}]   ;;  %s2068_s1 = inlined_call_operand.hbm [shape: f32[2,8,32], index: 1, kind: input, shape index: {}]   ;;  %s2069_s2 = inlined_call_operand.hbm [shape: f32[32,32], index: 2, kind: input, shape index: {}]   ;;  %s2070_s3 = inlined_call_operand.hbm [shape: f32[32,32], index: 3, kind: input, shape index: {}]   ;;  %s2071_s4 = inlined_call_operand.hbm [shape: f32[32,32], index: 4, kind: input, shape index: {}]   ;;  %s2072_s5 = inlined_call_operand.hbm [shape: f32[32,32], index: 5, kind: input, shape index: {}]   ;;  %s2073_s6 = inlined_call_operand.hbm [shape: f32[32,32], index: 6, kind: input, shape index: {}]   ;;  %s2074_s7 = inlined_call_operand.vmem [shape: f32[1,32], index: 7, kind: input, shape index: {}]   ;;  %s2075_s8 = inlined_call_operand.hbm [shape: f32[2,8,32], index: 8, kind: output, shape index: {0}]   ;;  %s2076_s9 = inlined_call_operand.hbm [shape: f32[2,8,8], index: 9, kind: output, shape index: {1}]  }
   0x1   :  { %2082 = sst [smem:[#allocation24_spill]] %s2069_s2 }
   0x2   :  { %2083 = sst [smem:[#allocation25_spill]] %s2070_s3 }
   0x3   :  { %2084 = sst [smem:[#allocation26_spill]] %s2071_s4 }
   0x4   :  { %2085 = sst [smem:[#allocation27_spill]] %s2072_s5 }
   0x5   :  { %2086 = sst [smem:[#allocation28_spill]] %s2073_s6 }
   0x6   :  { %2087 = sst [smem:[#allocation29_spill]] %s2075_s8 }
   0x7   :  { %15 = vsyncpa [#allocation3], 0 }
   0x8   :  { %17 = vsyncpa [#allocation3 + $0x1], 0 }
   0x9   :  { %18 = vsyncpa [#allocation6], 0 }
   0xa   :  { %20 = vsyncpa [#allocation6 + $0x1], 0 }
   0xb   :  { %21 = vsyncpa [#allocation9], 0 }
   0xc   :  { %22 = vsyncpa [#allocation12], 0 }
   0xd   :  { %23 = vsyncpa [#allocation4], 0 }
   0xe   :  { %25 = vsyncpa [#allocation4 + $0x1], 0 }
   0xf   :  { %26 = vsyncpa [#allocation16], 0 }
  0x10   :  { %28 = vsyncpa [#allocation16 + $0x1], 0  ;;  %s1642_s30 = smov 0   ;;  %s1644_s10 = smov 0  }
  0x11   :  { %s1646_s11 = smov 0   ;;  %s1648_s12 = smov 0  }
  0x12 LB: > { %s1579_s13 = smov [#allocation7]   ;;  %s1663_s15 = sadd.s32 4294967295, %s1577_s12   ;;  %s1577_s12 = sphi %s1648_s12, %s2116_s12   ;;  %s1573_s11 = sphi %s1646_s11, %s2115_s11   ;;  %s1569_s10 = sphi %s1644_s10, %s2114_s10   ;;  %s1565_s30 = sphi %s1642_s30, %s2113_s30  }
  0x13   : > { %s281_s14 = sshll.u32 %s1579_s13, 4  ;;  %p1040_p0 = scmp.ge.s32.totalorder %s1577_s12, 1  ;;  %s1668_s14 = int_to_ptr.vmem [resolvable:$true] %s281_s14 }
  0x14   : > { %p2078_p1 = scmp.eq.s32.totalorder %s1663_s15, 0  ;;  %p269_p2 = scmp.lt.s32.totalorder %s1577_s12, 3 }
  0x15   : > { %s1580_s17 = smov [#allocation8]   ;;  %s1581_s20 = smov [#allocation11]  }
  0x16   : > { %p1670_p3 = pnand %p1040_p0, %p269_p2  ;;  %s294_s18 = sshll.u32 %s1580_s17, 4  ;;  %s1683_s18 = int_to_ptr.vmem [resolvable:$true] %s294_s18 }
  0x17   : > { %s320_s21 = sshll.u32 %s1581_s20, 4  ;;  %s2090_s2 = sld [smem:[#allocation24_spill]]  ;;  %s1685_s21 = int_to_ptr.vmem [resolvable:$true] %s320_s21 }
  0x18   : > { %s2088_s16 = scalar_select %p1670_p3, 1, 0 }
  0x19   : > { %p1174_p5 = pneg %p1670_p3 }
  0x1b   : > { %p1679_p6 = pnand %p1174_p5, %p2078_p1 }
  0x1d   : > { %s1263_s24 = scalar_lea.hbm %s2090_s2, 512  ;;  %p1695_p8 = pneg %p1679_p6 }
  0x1e   : > { %p1264_p7 = scmp.ne.s32.totalorder %s2090_s2, %s1263_s24  ;;  %p1270_p11 = scmp.lt.u32.totalorder %s1263_s24, %s2090_s2 }
  0x20   : > { %p1266_p9 = pnand %p1695_p8, %p1264_p7 }
  0x22   : > { %p1267_p10 = pneg %p1266_p9 }
  0x24   : > { %p1272_p12 = pnand %p1270_p11, %p1267_p10 }
  0x26   : > { %1275 = shalt.err (!%p1272_p12)
}
  0x27   : > { %s1276_s13 = scalar_lea.vmem %s1668_s14, 512  ;;  %p1284_p5 = scmp.lt.s32.totalorder %s1668_s14, %s1668_s14 }
  0x28   : > { %p1277_p13 = scmp.ne.s32.totalorder %s1668_s14, %s1276_s13  ;;  %p1285_p4 = scmp.lt.s32.totalorder %s1276_s13, %s1276_s13 }
  0x2a   : > { %p1279_p0 = pnand %p1277_p13, %p1695_p8  ;;  %p1286_p7 = por %p1285_p4, %p1284_p5 }
  0x2c   : > { %p1280_p2 = pneg %p1279_p0 }
  0x2e   : > { %p1287_p9 = pnand %p1286_p7, %p1280_p2 }
  0x30   : > { %1290 = shalt.err (!%p1287_p9)
}
  0x31   : > { %s1582_s17 = smov 128   ;;  %s1583_s20 = smov 8  }
  0x32   : > { %1177 = dma.hbm_to_vmem [thread:$0]  (!%p1679_p6), %s2090_s2, 512, %s1668_s14, [#allocation6], %s1582_s17, %s1582_s17, %s1583_s20  }
  0x33   : > { %s2092_s3 = sld [smem:[#allocation25_spill]] }
  0x39   : > { %s1291_s26 = scalar_lea.hbm %s2092_s3, 512 }
  0x3a   : > { %p1292_p4 = scmp.ne.s32.totalorder %s2092_s3, %s1291_s26  ;;  %p1298_p12 = scmp.lt.u32.totalorder %s1291_s26, %s2092_s3 }
  0x3c   : > { %p1294_p10 = pnand %p1292_p4, %p1695_p8 }
  0x3e   : > { %p1295_p11 = pneg %p1294_p10 }
  0x40   : > { %p1300_p13 = pnand %p1298_p12, %p1295_p11 }
  0x42   : > { %1303 = shalt.err (!%p1300_p13)
}
  0x43   : > { %s1304_s14 = scalar_lea.vmem %s1683_s18, 512  ;;  %p1312_p7 = scmp.lt.s32.totalorder %s1683_s18, %s1683_s18 }
  0x44   : > { %p1305_p0 = scmp.ne.s32.totalorder %s1683_s18, %s1304_s14  ;;  %p1313_p9 = scmp.lt.s32.totalorder %s1304_s14, %s1304_s14 }
  0x46   : > { %p1307_p2 = pnand %p1305_p0, %p1695_p8  ;;  %p1314_p4 = por %p1313_p9, %p1312_p7 }
  0x48   : > { %p1308_p5 = pneg %p1307_p2 }
  0x4a   : > { %p1315_p10 = pnand %p1314_p4, %p1308_p5 }
  0x4c   : > { %1318 = shalt.err (!%p1315_p10)
}
  0x4d   : > { %1180 = dma.hbm_to_vmem [thread:$0]  (!%p1679_p6), %s2092_s3, 512, %s1683_s18, [#allocation9], %s1582_s17, %s1582_s17, %s1583_s20  }
  0x4e   : > { %s2093_s5 = sld [smem:[#allocation27_spill]] }
  0x54   : > { %s1319_s25 = scalar_lea.hbm %s2093_s5, 512 }
  0x55   : > { %p1320_p11 = scmp.ne.s32.totalorder %s2093_s5, %s1319_s25  ;;  %p1326_p0 = scmp.lt.u32.totalorder %s1319_s25, %s2093_s5 }
  0x57   : > { %p1322_p12 = pnand %p1320_p11, %p1695_p8 }
  0x59   : > { %p1323_p13 = pneg %p1322_p12 }
  0x5b   : > { %p1328_p2 = pnand %p1326_p0, %p1323_p13 }
  0x5d   : > { %1331 = shalt.err (!%p1328_p2)
}
  0x5e   : > { %s1332_s18 = scalar_lea.vmem %s1685_s21, 512  ;;  %p1340_p4 = scmp.lt.s32.totalorder %s1685_s21, %s1685_s21 }
  0x5f   : > { %p1333_p5 = scmp.ne.s32.totalorder %s1685_s21, %s1332_s18  ;;  %p1341_p10 = scmp.lt.s32.totalorder %s1332_s18, %s1332_s18 }
  0x61   : > { %p1335_p7 = pnand %p1333_p5, %p1695_p8  ;;  %p1342_p11 = por %p1341_p10, %p1340_p4 }
  0x63   : > { %p1336_p9 = pneg %p1335_p7 }
  0x65   : > { %p1343_p12 = pnand %p1342_p11, %p1336_p9 }
  0x67   : > { %1346 = shalt.err (!%p1343_p12)
}
  0x68   : > { %1186 = dma.hbm_to_vmem [thread:$0]  (!%p1679_p6), %s2093_s5, 512, %s1685_s21, [#allocation12], %s1582_s17, %s1582_s17, %s1583_s20  }
  0x69   : > { %s1584_s22 = smov [#allocation10]   ;;  %s1585_s24 = smov [#allocation13]  }
  0x6a   : > { %s307_s23 = sshll.u32 %s1584_s22, 4  ;;  %s333_s25 = sshll.u32 %s1585_s24, 4  ;;  %s308_s23 = int_to_ptr.vmem [resolvable:$true] %s307_s23  ;;  %s334_s25 = int_to_ptr.vmem [resolvable:$true] %s333_s25 }
  0x6b   : > { %s2094_s4 = sld [smem:[#allocation26_spill]] }
  0x71   : > { %s1347_s29 = scalar_lea.hbm %s2094_s4, 512 }
  0x72   : > { %p1348_p13 = scmp.ne.s32.totalorder %s2094_s4, %s1347_s29  ;;  %p1354_p5 = scmp.lt.u32.totalorder %s1347_s29, %s2094_s4 }
  0x74   : > { %p1350_p0 = pnand %p1348_p13, %p1695_p8 }
  0x76   : > { %p1351_p2 = pneg %p1350_p0 }
  0x78   : > { %p1356_p7 = pnand %p1354_p5, %p1351_p2 }
  0x7a   : > { %1359 = shalt.err (!%p1356_p7)
}
  0x7b   : > { %s1360_s21 = scalar_lea.vmem %s308_s23, 512  ;;  %p1368_p11 = scmp.lt.s32.totalorder %s308_s23, %s308_s23 }
  0x7c   : > { %p1361_p9 = scmp.ne.s32.totalorder %s308_s23, %s1360_s21  ;;  %p1369_p12 = scmp.lt.s32.totalorder %s1360_s21, %s1360_s21 }
  0x7e   : > { %p1363_p4 = pnand %p1361_p9, %p1695_p8  ;;  %p1370_p1 = por %p1369_p12, %p1368_p11 }
  0x80   : > { %p1364_p10 = pneg %p1363_p4 }
  0x82   : > { %p1371_p3 = pnand %p1370_p1, %p1364_p10 }
  0x84   : > { %1374 = shalt.err (!%p1371_p3)
}
  0x85   : > { %1183 = dma.hbm_to_vmem [thread:$0]  (!%p1679_p6), %s2094_s4, 512, %s308_s23, [#allocation9], %s1582_s17, %s1582_s17, %s1583_s20  }
  0x86   : > { %s2095_s6 = sld [smem:[#allocation28_spill]] }
  0x8c   : > { %s1375_s26 = scalar_lea.hbm %s2095_s6, 512 }
  0x8d   : > { %p1376_p1 = scmp.ne.s32.totalorder %s2095_s6, %s1375_s26  ;;  %p1382_p0 = scmp.lt.u32.totalorder %s1375_s26, %s2095_s6 }
  0x8f   : > { %p1378_p3 = pnand %p1376_p1, %p1695_p8 }
  0x91   : > { %p1379_p13 = pneg %p1378_p3 }
  0x93   : > { %p1384_p2 = pnand %p1382_p0, %p1379_p13 }
  0x95   : > { %1387 = shalt.err (!%p1384_p2)
}
  0x96   : > { %s1388_s14 = scalar_lea.vmem %s334_s25, 512  ;;  %p1396_p4 = scmp.lt.s32.totalorder %s334_s25, %s334_s25 }
  0x97   : > { %p1389_p5 = scmp.ne.s32.totalorder %s334_s25, %s1388_s14  ;;  %p1397_p10 = scmp.lt.s32.totalorder %s1388_s14, %s1388_s14 }
  0x99   : > { %p1391_p7 = pnand %p1389_p5, %p1695_p8  ;;  %p1398_p11 = por %p1397_p10, %p1396_p4 }
  0x9b   : > { %p1392_p9 = pneg %p1391_p7 }
  0x9d   : > { %p1399_p12 = pnand %p1398_p11, %p1392_p9 }
  0x9f   : > { %1402 = shalt.err (!%p1399_p12)
}
  0xa0   : > { %1189 = dma.hbm_to_vmem [thread:$0]  (!%p1679_p6), %s2095_s6, 512, %s334_s25, [#allocation12], %s1582_s17, %s1582_s17, %s1583_s20  }
  0xa1   : > { %s1039_s19 = sadd.s32 4294967294, %s1577_s12   ;;  %s1815_s27 = sadd.s32 1, %s1577_s12  }
  0xa2   : > { %s41_s2 = sadd.s32 1, %s1573_s11  ;;  %s38_s8 = ssub.s32 %s1577_s12, %s1815_s27 }
  0xa3   : > { %p48_p8 = scmp.ne.s32.totalorder %s1573_s11, %s1569_s10  ;;  %p39_p1 = scmp.eq.s32.totalorder %s38_s8, 0 }
  0xa4   : > { %p49_p3 = scmp.eq.s32.totalorder %s1577_s12, 0  ;;  %p54_p13 = scmp.ne.s32.totalorder %s1569_s10, %s1565_s30 }
  0xa5   : > { %p230_p0 = scmp.eq.s32.totalorder %s1663_s15, 1  ;;  %p2096_p5 = scmp.eq.s32.totalorder %s1663_s15, 0 }
  0xa6   : > { %s1827_s22 = scalar_select %p39_p1, %s1573_s11, %s41_s2  }
  0xa7   : > { %p50_p2 = por %p49_p3, %p48_p8  ;;  %p1831_p7 = por %p2096_p5, %p54_p13 }
  0xa8   : > { %p1835_p6 = por %p230_p0, %p48_p8  ;;  %p236_p9 = scmp.eq.s32.totalorder %s1039_s19, 1 }
  0xa9   : > { %s2097_s24 = scalar_select %p1831_p7, 1, 0 }
  0xaa   : > { %s2098_s17 = scalar_select %p1835_p6, 1, 0 }
  0xab   : > { %p1209_p4 = scmp.lt.s32.totalorder %s1577_s12, 2  ;;  %s350_s20 = sand.u32 1, %s1573_s11  }
  0xac   : > { %p1841_p10 = por %p236_p9, %p54_p13  ;;  %s1845_s26 = sshll.u32 %s350_s20, 3 }
  0xad   : > { %s1048_s28 = sshll.u32 %s1577_s12, 7  ;;  %s354_s14 = scalar_lea.vmem [#allocation2], %s1845_s26 }
  0xae   : > { %s2099_s25 = scalar_select %p1841_p10, 1, 0 }
  0xaf   : > { %s1851_s18 = scalar_lea.hbm %s2067_s0, %s1048_s28  ;;  %s361_s23 = sshll.u32 %s354_s14, 4  ;;  %s1858_s23 = int_to_ptr.vmem [resolvable:$true] %s361_s23 }
  0xb0   : > { %p1854_p11 = pnand %p1209_p4, %p50_p2  ;;  %s1863_s8 = scalar_lea.hbm %s2068_s1, %s1048_s28 }
  0xb1   : > { %s351_s29 = scalar_lea.sflag [#allocation3], %s350_s20  ;;  %s1403_s13 = scalar_lea.hbm %s1851_s18, 128 }
  0xb2   : > { %p1404_p12 = scmp.ne.s32.totalorder %s1851_s18, %s1403_s13  ;;  %p1405_p8 = pneg %p1854_p11 }
  0xb3   : > { %s1408_s4 = scalar_lea.hbm %s2067_s0, 256  ;;  %p1409_p13 = scmp.lt.u32.totalorder %s1851_s18, %s2067_s0 }
  0xb4   : > { %p1406_p1 = pnand %p1405_p8, %p1404_p12  ;;  %p1410_p0 = scmp.lt.u32.totalorder %s1408_s4, %s1403_s13 }
  0xb5   : > { %p1412_p5 = scmp.lt.u32.totalorder %s1403_s13, %s1851_s18 }
  0xb6   : > { %p1407_p3 = pneg %p1406_p1  ;;  %p1411_p2 = por %p1410_p0, %p1409_p13 }
  0xb8   : > { %p1413_p9 = por %p1412_p5, %p1411_p2 }
  0xba   : > { %p1414_p4 = pnand %p1413_p9, %p1407_p3 }
  0xbc   : > { %1417 = shalt.err (!%p1414_p4)
}
  0xbd   : > { %s1418_s20 = scalar_lea.vmem %s1858_s23, 128  ;;  %s1586_s3 = smov [#allocation2]  }
  0xbe   : > { %p1419_p12 = scmp.ne.s32.totalorder %s1858_s23, %s1418_s20  ;;  %s1423_s28 = sshll.u32 %s1586_s3, 4  ;;  %s1424_s28 = int_to_ptr.vmem [resolvable:$false] %s1423_s28 }
  0xbf   : > { %s1425_s5 = scalar_lea.vmem %s1424_s28, 256  ;;  %p1426_p6 = scmp.lt.s32.totalorder %s1858_s23, %s1424_s28 }
  0xc0   : > { %p1421_p1 = pnand %p1419_p12, %p1405_p8  ;;  %p1427_p13 = scmp.lt.s32.totalorder %s1425_s5, %s1418_s20 }
  0xc2   : > { %p1422_p10 = pneg %p1421_p1  ;;  %p1428_p0 = por %p1427_p13, %p1426_p6 }
  0xc4   : > { %p1429_p2 = pnand %p1428_p0, %p1422_p10 }
  0xc6   : > { %1432 = shalt.err (!%p1429_p2)
}
  0xc7   : > { %1193 = dma.hbm_to_vmem [thread:$0]  (!%p1854_p11), %s1851_s18, 128, %s1858_s23, %s351_s29  }
  0xc8   : > { %s368_s4 = sand.u32 1, %s1577_s12   ;;  %s372_s6 = scalar_lea.vmem [#allocation5], %s1845_s26 }
  0xc9   : > { %s379_s19 = sshll.u32 %s372_s6, 4  ;;  %s369_s2 = scalar_lea.sflag [#allocation6], %s368_s4  ;;  %s380_s19 = int_to_ptr.vmem [resolvable:$true] %s379_s19 }
  0xca   : > { %s1433_s13 = scalar_lea.hbm %s1863_s8, 128  ;;  %s1438_s3 = scalar_lea.hbm %s2068_s1, 256 }
  0xcb   : > { %p1434_p6 = scmp.ne.s32.totalorder %s1863_s8, %s1433_s13  ;;  %p1439_p5 = scmp.lt.u32.totalorder %s1863_s8, %s2068_s1 }
  0xcc   : > { %p1440_p9 = scmp.lt.u32.totalorder %s1438_s3, %s1433_s13  ;;  %p1442_p12 = scmp.lt.u32.totalorder %s1433_s13, %s1863_s8 }
  0xcd   : > { %p1436_p10 = pnand %p1434_p6, %p1405_p8 }
  0xce   : > { %p1441_p4 = por %p1440_p9, %p1439_p5 }
  0xcf   : > { %p1437_p3 = pneg %p1436_p10 }
  0xd0   : > { %p1443_p1 = por %p1442_p12, %p1441_p4 }
  0xd2   : > { %p1444_p13 = pnand %p1443_p1, %p1437_p3 }
  0xd4   : > { %1447 = shalt.err (!%p1444_p13)
}
  0xd5   : > { %s1448_s26 = scalar_lea.vmem %s380_s19, 128  ;;  %s1587_s18 = smov [#allocation5]  }
  0xd6   : > { %p1449_p0 = scmp.ne.s32.totalorder %s380_s19, %s1448_s26  ;;  %s1453_s23 = sshll.u32 %s1587_s18, 4  ;;  %s1454_s23 = int_to_ptr.vmem [resolvable:$false] %s1453_s23 }
  0xd7   : > { %s1455_s29 = scalar_lea.vmem %s1454_s23, 256  ;;  %p1456_p10 = scmp.lt.s32.totalorder %s380_s19, %s1454_s23 }
  0xd8   : > { %p1451_p2 = pnand %p1449_p0, %p1405_p8  ;;  %p1457_p7 = scmp.lt.s32.totalorder %s1455_s29, %s1448_s26 }
  0xda   : > { %p1452_p6 = pneg %p1451_p2  ;;  %p1458_p5 = por %p1457_p7, %p1456_p10 }
  0xdc   : > { %p1459_p9 = pnand %p1458_p5, %p1452_p6 }
  0xde   : > { %1462 = shalt.err (!%p1459_p9)
}
  0xdf   : > { %1196 = dma.hbm_to_vmem [thread:$0]  (!%p1854_p11), %s1863_s8, 128, %s380_s19, %s369_s2  }
  0xe0   : > { %p2101_p3 = scmp.ne.s32.totalorder %s2088_s16, 0 }
  0xe1   : > { %s1914_s4 = sand.u32 (!%p2101_p3), 1, %s1569_s10   ;;  %p2102_p7 = scmp.ne.s32.totalorder (!%p2101_p3), %s2097_s24, 0 }
  0xe2   : > { %388 = sbr.rel (%p2101_p3) target bundleno = 1462 (0x5b6), region = 52  ;;  %s1917_s6 = sshll.u32 (!%p2101_p3), %s1914_s4, 3 }
  0xe3   : > { %s391_s13 = scalar_lea.sflag (!%p2101_p3), [#allocation3], %s1914_s4  ;;  %s394_s14 = scalar_lea.vmem (!%p2101_p3), [#allocation2], %s1917_s6 }
  0xe9   : > { %1536 = dma.done.wait (%p2102_p7), %s391_s13, 128  }
  0xea   : > { %1538 = vsyncadd (%p2102_p7), %s391_s13, 4294967168  ;;  %s399_s16 = sand.u32 1, %s1663_s15   ;;  %s403_s8 = scalar_lea.vmem [#allocation5], %s1917_s6 }
  0xeb   : > { %s400_s21 = scalar_lea.sflag [#allocation6], %s399_s16 }
  0xec   : > { %1540 = dma.done.wait (%p2102_p7), %s400_s21, 128  }
  0xed   : > { %1542 = vsyncadd (%p2102_p7), %s400_s21, 4294967168  ;;  %p2103_p11 = scmp.eq.s32.totalorder %s1663_s15, 0 }
  0xef   : > { %1544 = dma.done.wait (%p2103_p11), [#allocation6], 512   ;;  %p2104_p8 = pmov %p2103_p11 }
  0xf1   : > { %1546 = vsyncadd (%p2104_p8), [#allocation6], 4294966784  ;;  %p2105_p4 = pmov %p2104_p8 }
  0xf3   : > { %1548 = dma.done.wait (%p2105_p4), [#allocation9], 1024   ;;  %p2106_p12 = pmov %p2105_p4 }
  0xf4   : > { %p2107_p1 = pmov %p2105_p4 }
  0xf5   : > { %1550 = vsyncadd (%p2106_p12), [#allocation9], 4294966272 }
  0xf6   : > { %1552 = dma.done.wait (%p2107_p1), [#allocation12], 1024   ;;  %p2108_p13 = pmov %p2107_p1 }
  0xf7   : > { %v1588_v0 = vmov 0.0   ;;  %vm1589_vm0 = vmmov 0   ;;  %v473_v1 = vld [vmem:[#allocation7] sm:$0xff]  ;;  %v474_v2 = vld [vmem:[#allocation7 + $0x8] sm:$0xff]  ;;  %v475_v3 = vld [vmem:[#allocation7 + $0x10] sm:$0xff]  ;;  %vm479_vm1 = vcmask 261120  }
  0xf8   : > { %1554 = vsyncadd (%p2108_p13), [#allocation12], 4294966272  ;;  %1094 = vmatprep.subr.bf16.mxu0 %v1588_v0  ;;  %1102 = vmatprep.subr.bf16.mxu1 %v1588_v0  ;;  %v477_v4 = vpack.c.bf16 %v474_v2, %v473_v1  ;;  %v476_v5 = vld [vmem:[#allocation7 + $0x18] sm:$0xff]  ;;  %v523_v6 = vld [vmem:[#allocation8] sm:$0xff]  ;;  %vm667_vm2 = vcmask 64512   ;;  %vm685_vm3 = vcmask 1043456  }
  0xf9   : > { %1098 = vmatprep.mubr.msk.bf16.mxu0 %vm1589_vm0, %v1588_v0  ;;  %1106 = vmatprep.mubr.msk.bf16.mxu1 %vm1589_vm0, %v1588_v0  ;;  %v524_v7 = vld [vmem:[#allocation8 + $0x8] sm:$0xff]  ;;  %v525_v9 = vld [vmem:[#allocation8 + $0x10] sm:$0xff]  ;;  %v526_v10 = vld [vmem:[#allocation8 + $0x18] sm:$0xff]  ;;  %v478_v11 = vpack.c.bf16 %v476_v5, %v475_v3  ;;  %s467_s24 = scalar_lea.vmem [#allocation15], %s1917_s6  ;;  %s1071_s19 = sshll.u32 %s1663_s15, 7 }
  0xfa   : > { %v527_v8 = vpack.c.bf16 %v524_v7, %v523_v6  ;;  %1095 = vmatpush3.bf16.msra.mxu0 %v477_v4  ;;  %v470_v12 = vld [vmem:[%s403_s8] sm:$0xff]  ;;  %v528_v13 = vpack.c.bf16 %v526_v10, %v525_v9  ;;  %v469_v14 = vld [vmem:[%s394_s14] sm:$0xff]  ;;  %s1993_s3 = scalar_lea.hbm %s2076_s9, %s1071_s19  ;;  %s867_s28 = sshll.u32 %s467_s24, 4  ;;  %s868_s28 = int_to_ptr.vmem [resolvable:$true] %s867_s28 }
  0xfb   : > { %1096 = vmatprep.subr.bf16.mxu0 %v1588_v0  ;;  %v472_v15 = vpack.c.bf16 %v470_v12, %v470_v12  ;;  %v1953_v16 = vpack.c.bf16 %v469_v14, %v469_v14  ;;  %v572_v29 = vld [vmem:[#allocation10] sm:$0xff]  ;;  %v573_v30 = vld [vmem:[#allocation10 + $0x8] sm:$0xff]  ;;  %v574_v31 = vld [vmem:[#allocation10 + $0x10] sm:$0xff]  ;;  %s841_s5 = scalar_lea.sflag [#allocation16], %s1914_s4  ;;  %s1463_s26 = scalar_lea.vmem %s868_s28, 128 }
  0xfc   : > { %1103 = vmatpush3.bf16.msra.mxu1 %v527_v8  ;;  %v576_v32 = vpack.c.bf16 %v573_v30, %v572_v29  ;;  %v575_v33 = vld [vmem:[#allocation10 + $0x18] sm:$0xff]  ;;  %v736_v51 = vld [vmem:[#allocation13] sm:$0xff]  ;;  %v737_v52 = vld [vmem:[#allocation13 + $0x8] sm:$0xff]  ;;  %p1464_p0 = scmp.ne.s32.totalorder %s868_s28, %s1463_s26  ;;  %p2109_p2 = scmp.ne.s32.totalorder %s2098_s17, 0 }
  0xfd   : > { %1104 = vmatprep.subr.bf16.mxu1 %v1588_v0  ;;  %v577_v34 = vpack.c.bf16 %v575_v33, %v574_v31  ;;  %v740_v53 = vpack.c.bf16 %v737_v52, %v736_v51  ;;  %v738_v54 = vld [vmem:[#allocation13 + $0x10] sm:$0xff]  ;;  %v739_v55 = vld [vmem:[#allocation13 + $0x18] sm:$0xff]  ;;  %v730_v58 = vld [vmem:[#allocation11] sm:$0xff]  ;;  %s1590_s18 = smov [#allocation15]  }
  0xfe   : > { %1097 = vmatpush3.bf16.msra.mxu0 %v478_v11  ;;  %v741_v56 = vpack.c.bf16 %v739_v55, %v738_v54  ;;  %v731_v59 = vld [vmem:[#allocation11 + $0x8] sm:$0xff]  ;;  %v732_v1 = vld [vmem:[#allocation11 + $0x10] sm:$0xff]  ;;  %v733_v2 = vld [vmem:[#allocation11 + $0x18] sm:$0xff]  ;;  %p1465_p6 = pnand %p1464_p0, %p2109_p2  ;;  %s1467_s23 = sshll.u32 %s1590_s18, 4  ;;  %s1468_s23 = int_to_ptr.vmem [resolvable:$false] %s1467_s23 }
  0xff   : > { %1110 = vmatprep.subr.bf16.mxu0 %v1588_v0  ;;  %v734_v62 = vpack.c.bf16 %v731_v59, %v730_v58  ;;  %v735_v3 = vpack.c.bf16 %v733_v2, %v732_v1  ;;  %s1469_s29 = scalar_lea.vmem %s1468_s23, 256  ;;  %p1470_p5 = scmp.lt.s32.totalorder %s868_s28, %s1468_s23 }
 0x100   : > { %1105 = vmatpush3.bf16.msra.mxu1 %v528_v13  ;;  %p1466_p10 = pneg %p1465_p6  ;;  %p1471_p9 = scmp.lt.s32.totalorder %s1469_s29, %s1463_s26 }
 0x101   : > { %1118 = vmatprep.subr.bf16.mxu1 %v1588_v0  ;;  %1099 = vmatmul.mubr.msk.bf16.vlgmr.msra.gmra.mrb[0].mxu0 %vm479_vm1, %v472_v15 }
 0x102   : > { %1114 = vmatprep.mubr.msk.bf16.mxu0 %vm1589_vm0, %v1588_v0  ;;  %1111 = vmatpush3.bf16.msra.mxu0 %v576_v32  ;;  %p1472_p3 = por %p1471_p9, %p1470_p5 }
 0x103   : > { %1107 = vmatmul.mubr.msk.bf16.vlgmr.msra.gmra.mrb[0].mxu1 %vm479_vm1, %v1953_v16  ;;  %1112 = vmatprep.subr.bf16.mxu0 %v1588_v0 }
 0x104   : > { %1120 = vmatprep.mubr.msk.bf16.mxu1 %vm1589_vm0, %v1588_v0  ;;  %p1473_p7 = pnand %p1472_p3, %p1466_p10 }
 0x106   : > { %1113 = vmatpush3.bf16.msra.mxu0 %v577_v34 }
 0x107   : > { %1124 = vmatprep.subr.bf16.mxu0 %v1588_v0 }
 0x109   : > { %1115 = vmatmul.mubr.msk.bf16.vlgmr.msra.gmra.mrb[4].mxu0 %vm479_vm1, %v472_v15 }
 0x10a   : > { %1126 = vmatprep.mubr.msk.bf16.mxu0 %vm1589_vm0, %v1588_v0 }
 0x1d4   : > { %v517_v17 = vpop.f32.mrb[0].mxu0 }
 0x1d5   : > { %v620_v18 = vpack.c.bf16 %v517_v17, %v517_v17  ;;  %v1100_v19 = vpop.f32.mrb[1].mxu0 }
 0x1d6   : > { %v566_v20 = vpop.f32.mrb[0].mxu1  ;;  %v520_v21 = vpop.f32.mrb[2].mxu0 }
 0x1d7   : > { %v1108_v22 = vpop.f32.mrb[1].mxu1  ;;  %v625_v23 = vsel %vm479_vm1, %v620_v18, 0  ;;  %v1101_v24 = vpop.f32.mrb[3].mxu0  ;;  %v618_v25 = vmul.f32 0.17677669, %v566_v20 }
 0x1d8   : > { %v569_v26 = vpop.f32.mrb[2].mxu1  ;;  %1119 = vmatpush3.bf16.xpose.msra.mxu1 %v625_v23 }
 0x1d9   : > { %v1109_v27 = vpop.f32.mrb[3].mxu1  ;;  %1130 = vmatprep.subr.bf16.mxu1 %v1588_v0  ;;  %v619_v28 = vpack.c.bf16 %v618_v25, %v618_v25 }
 0x1dc   : > { %v612_v45 = vpop.f32.mrb[4].mxu0 }
 0x1dd   : > { %v1116_v46 = vpop.f32.mrb[5].mxu0  ;;  %v681_v49 = vpack.c.bf16 %v612_v45, %v612_v45 }
 0x1de   : > { %v615_v47 = vpop.f32.mrb[6].mxu0 }
 0x1df   : > { %1121 = vmatmul.mubr.msk.bf16.vlgmr.msra.gmra.mrb[4].mxu1 %vm479_vm1, %v619_v28  ;;  %v1117_v48 = vpop.f32.mrb[7].mxu0  ;;  %v687_v50 = vsel %vm685_vm3, %v681_v49, 0 }
 0x1e0   : > { %1134 = vmatprep.mubr.msk.bf16.mxu1 %vm1589_vm0, %v1588_v0  ;;  %1125 = vmatpush3.bf16.msra.mxu0 %v687_v50 }
 0x1e1   : > { %1138 = vmatprep.subr.bf16.mxu0 %v1588_v0  ;;  %1131 = vmatpush3.bf16.msra.mxu1 %v740_v53 }
 0x1e2   : > { %1132 = vmatprep.subr.bf16.mxu1 %v1588_v0 }
 0x1e5   : > { %1133 = vmatpush3.bf16.msra.mxu1 %v741_v56 }
 0x1e8   : > { %1135 = vmatmul.mubr.msk.bf16.vlgmr.msra.gmra.mrb[8].mxu1 %vm479_vm1, %v1953_v16 }
 0x2b2   : > { %v661_v35 = vpop.f32.mrb[4].mxu1 }
 0x2b3   : > { %v1122_v36 = vpop.f32.mrb[5].mxu1  ;;  %v668_v37 = vsel %vm667_vm2, %v661_v35, -inf }
 0x2b4   : > { %669 = vmax.xlane.f32.xlu0 %v668_v37  ;;  %v664_v38 = vpop.f32.mrb[6].mxu1 }
 0x2b5   : > { %v1123_v39 = vpop.f32.mrb[7].mxu1 }
 0x2bb   : > { %v776_v4 = vpop.f32.mrb[8].mxu1 }
 0x2bc   : > { %v1136_v5 = vpop.f32.mrb[9].mxu1 }
 0x2bd   : > { %v779_v6 = vpop.f32.mrb[10].mxu1 }
 0x2be   : > { %v1137_v7 = vpop.f32.mrb[11].mxu1 }
 0x341   : > { %v670_v40 = vpop.xlane.xlu0 %669 }
 0x342   : > { %v671_v41 = vsub.f32 %v661_v35, %v670_v40 }
 0x344   : > { %v672_v42 = vmul.f32 1.442695, %v671_v41 }
 0x346   : > { %1257 = vpow2.f32 %v672_v42 }
 0x350   : > { %v1258_v43 = vpop.eup %1257 }
 0x351   : > { %v674_v44 = vsel %vm667_vm2, %v1258_v43, 0.0 }
 0x352   : > { %675 = vadd.xlane.f32.xlu0 %v674_v44 }
 0x3df   : > { %v676_v57 = vpop.xlane.xlu0 %675 }
 0x3e0   : > { %1259 = vrcp.f32 %v676_v57 }
 0x3ea   : > { %v1260_v60 = vpop.eup %1259 }
 0x3eb   : > { %v678_v61 = vmul.f32 %v1260_v60, %v1258_v43 }
 0x3ed   : > { %v680_v63 = vpack.c.bf16 %v678_v61, %v678_v61  ;;  %679 = vst.msk [vmem:[%s467_s24] sm:$0xff] %vm667_vm2, %v678_v61 }
 0x3ef   : > { %1127 = vmatmul.mubr.msk.bf16.vlgmr.msra.gmra.mrb[8].mxu0 %vm667_vm2, %v680_v63 }
 0x3f0   : > { %1139 = vmatpush3.bf16.msra.mxu0 %v734_v62  ;;  %1142 = vmatprep.mubr.msk.bf16.mxu0 %vm1589_vm0, %v1588_v0 }
 0x3f1   : > { %1140 = vmatprep.subr.bf16.mxu0 %v1588_v0 }
 0x3f4   : > { %1141 = vmatpush3.bf16.msra.mxu0 %v735_v3 }
 0x4c2   : > { %v723_v8 = vpop.f32.mrb[8].mxu0 }
 0x4c3   : > { %v729_v9 = vpack.c.bf16 %v723_v8, %v723_v8  ;;  %v1128_v10 = vpop.f32.mrb[9].mxu0 }
 0x4c4   : > { %v726_v11 = vpop.f32.mrb[10].mxu0 }
 0x4c5   : > { %v1129_v12 = vpop.f32.mrb[11].mxu0  ;;  %1143 = vmatmul.mubr.msk.bf16.vlgmr.msra.gmra.mrb[12].mxu0 %vm479_vm1, %v729_v9 }
 0x4c6   : > { %1476 = shalt.err (!%p1473_p7)
}
 0x4c7   : > { %s1477_s13 = scalar_lea.hbm %s1993_s3, 128  ;;  %s1481_s21 = scalar_lea.hbm %s2076_s9, 256 }
 0x4c8   : > { %p1478_p11 = scmp.ne.s32.totalorder %s1993_s3, %s1477_s13  ;;  %p1482_p12 = scmp.lt.u32.totalorder %s1993_s3, %s2076_s9 }
 0x4c9   : > { %p1483_p1 = scmp.lt.u32.totalorder %s1481_s21, %s1477_s13  ;;  %p1485_p0 = scmp.lt.u32.totalorder %s1477_s13, %s1993_s3 }
 0x4ca   : > { %p1479_p8 = pnand %p1478_p11, %p2109_p2 }
 0x4cb   : > { %p1484_p13 = por %p1483_p1, %p1482_p12 }
 0x4cc   : > { %p1480_p4 = pneg %p1479_p8 }
 0x4cd   : > { %p1486_p6 = por %p1485_p0, %p1484_p13 }
 0x4cf   : > { %p1487_p10 = pnand %p1486_p6, %p1480_p4 }
 0x4d1   : > { %1490 = shalt.err (!%p1487_p10)
}
 0x4d2   : > { %1171 = dma.vmem_to_hbm [thread:$0]  (%p2109_p2), %s868_s28, 128, %s1993_s3, %s841_s5   ;;  %v1068_v13 = vld [vmem:[%s2074_s7] ss:$0 sm:$0xff] }
 0x4d3   : > { %s460_s26 = scalar_lea.vmem [#allocation14], %s1917_s6  ;;  %s2110_s13 = sld [smem:[#allocation29_spill]] }
 0x4d4   : > { %s854_s18 = sshll.u32 %s460_s26, 4  ;;  %s836_s3 = scalar_lea.sflag [#allocation4], %s1914_s4  ;;  %s2024_s18 = int_to_ptr.vmem [resolvable:$true] %s854_s18 }
 0x4d5   : > { %s1491_s28 = scalar_lea.vmem %s2024_s18, 128  ;;  %s1591_s15 = smov [#allocation14]  }
 0x4d6   : > { %p1492_p5 = scmp.ne.s32.totalorder %s2024_s18, %s1491_s28  ;;  %s1495_s6 = sshll.u32 %s1591_s15, 4  ;;  %s1496_s6 = int_to_ptr.vmem [resolvable:$false] %s1495_s6 }
 0x4d7   : > { %s1497_s5 = scalar_lea.vmem %s1496_s6, 256  ;;  %p1498_p7 = scmp.lt.s32.totalorder %s2024_s18, %s1496_s6 }
 0x4d8   : > { %p1493_p9 = pnand %p1492_p5, %p2109_p2  ;;  %p1499_p11 = scmp.lt.s32.totalorder %s1497_s5, %s1491_s28 }
 0x4d9   : > { %s2022_s14 = scalar_lea.hbm %s2110_s13, %s1071_s19 }
 0x4da   : > { %p1494_p3 = pneg %p1493_p9  ;;  %p1500_p8 = por %p1499_p11, %p1498_p7 }
 0x4dc   : > { %p1501_p4 = pnand %p1500_p8, %p1494_p3 }
 0x598   : > { %v819_v0 = vpop.f32.mrb[12].mxu0 }
 0x599   : > { %v820_v14 = vadd.f32 %v819_v0, %v776_v4  ;;  %v1144_v15 = vpop.f32.mrb[13].mxu0 }
 0x59a   : > { %v822_v16 = vpop.f32.mrb[14].mxu0 }
 0x59b   : > { %v832_v17 = vadd.f32 %v1068_v13, %v820_v14  ;;  %v1145_v18 = vpop.f32.mrb[15].mxu0 }
 0x59d   : > { %1261 = vtanh.f32 %v832_v17 }
 0x5a7   : > { %v1262_v19 = vpop.eup %1261 }
 0x5a8   : > { %834 = vst.msk [vmem:[%s460_s26] sm:$0xff] %vm479_vm1, %v1262_v19 }
 0x5a9   : > { %1504 = shalt.err (!%p1501_p4)
}
 0x5aa   : > { %s1505_s4 = scalar_lea.hbm %s2022_s14, 128  ;;  %s1509_s21 = scalar_lea.hbm %s2110_s13, 256 }
 0x5ab   : > { %p1506_p12 = scmp.ne.s32.totalorder %s2022_s14, %s1505_s4  ;;  %p1510_p0 = scmp.lt.u32.totalorder %s2022_s14, %s2110_s13 }
 0x5ac   : > { %p1511_p6 = scmp.lt.u32.totalorder %s1509_s21, %s1505_s4  ;;  %p1513_p5 = scmp.lt.u32.totalorder %s1505_s4, %s2022_s14 }
 0x5ad   : > { %p1507_p1 = pnand %p1506_p12, %p2109_p2 }
 0x5ae   : > { %p1512_p10 = por %p1511_p6, %p1510_p0 }
 0x5af   : > { %p1508_p13 = pneg %p1507_p1 }
 0x5b0   : > { %p1514_p9 = por %p1513_p5, %p1512_p10 }
 0x5b2   : > { %p1515_p3 = pnand %p1514_p9, %p1508_p13 }
 0x5b4   : > { %1518 = shalt.err (!%p1515_p3)
}
 0x5b5   : > { %1170 = dma.vmem_to_hbm [thread:$0]  (%p2109_p2), %s2024_s18, 128, %s2022_s14, %s836_s3  }
 0x5b6 PF: > { %s879_s2 = sand.u32 1, %s1565_s30   ;;  %p2111_p7 = scmp.ne.s32.totalorder %s2099_s25, 0 }
 0x5b7   : > { %p2112_p11 = scmp.ge.s32.totalorder %s1577_s12, 2  ;;  %s880_s20 = scalar_lea.sflag [#allocation4], %s879_s2 }
 0x5b9   : > { %p1198_p8 = pnand %p2112_p11, %p2111_p7 }
 0x5bb   : > { %1556 = dma.done.wait (!%p1198_p8), %s880_s20, 128  }
 0x5bc   : > { %1558 = vsyncadd (!%p1198_p8), %s880_s20, 4294967168  ;;  %s889_s26 = scalar_lea.sflag [#allocation16], %s879_s2 }
 0x5bd   : > { %1560 = dma.done.wait (!%p1198_p8), %s889_s26, 128  }
 0x5be   : > { %1562 = vsyncadd (!%p1198_p8), %s889_s26, 4294967168  ;;  %p31_p2 = scmp.ge.s32.totalorder %s1815_s27, 4   ;;  %s2113_s30 = smov %s1569_s10 }
 0x5bf   : > { %s2114_s10 = smov %s1573_s11  ;;  %s2115_s11 = smov %s1827_s22 }
 0x5c0   : > { %s2116_s12 = smov %s1815_s27  ;;  %33 = sbr.rel (!%p31_p2) target bundleno = 18 (0x12), region = 147 }
 0x5c7   :  { %894 = vsyncpa [#allocation3], 1 }
 0x5c8   :  { %896 = vsyncpa [#allocation3 + $0x1], 1 }
 0x5c9   :  { %897 = vsyncpa [#allocation6], 1 }
 0x5ca   :  { %899 = vsyncpa [#allocation6 + $0x1], 1 }
 0x5cb   :  { %900 = vsyncpa [#allocation9], 1 }
 0x5cc   :  { %901 = vsyncpa [#allocation12], 1 }
 0x5cd   :  { %902 = vsyncpa [#allocation4], 1 }
 0x5ce   :  { %904 = vsyncpa [#allocation4 + $0x1], 1 }
 0x5cf   :  { %905 = vsyncpa [#allocation16], 1 }
 0x5d0   :  { %907 = vsyncpa [#allocation16 + $0x1], 1 }

</bundles_post_ra>
